<compile_context>
chip_gen: v5e
topology: v5e:2x2
jax: 0.10.0
libtpu: 0.0.40
codegen_flags: <defaults>
</compile_context>

<pallas_src>
import functools

import numpy as np
import jax
import jax.numpy as jnp
from jax.experimental import pallas as pl
from jax.experimental.pallas import tpu as pltpu


def _round_up(v, m):
    return ((v + m - 1) // m) * m


def _vmem_budget_bytes():
    """Per-step working-set budget + scoped VMEM limit, per TPU generation."""
    budget = 10 * 1024 * 1024           # v7x default (64 MiB VMEM / TC)
    limit = 32 * 1024 * 1024
    try:
        info = pltpu.get_tpu_info()
        cap = getattr(info, "vmem_capacity_bytes", None)
        if cap is not None and cap >= 128 * 1024 * 1024:   # v5e / v6e
            budget = 16 * 1024 * 1024
            limit = 64 * 1024 * 1024
    except Exception:
        pass
    return budget, limit


def _choose_tile(n_modes, c_in, c_out, budget_bytes):
    """Pad mode count to 128 and pick a divisor lane-tile that fits the budget."""
    mp = _round_up(n_modes, 128)
    # double-buffered per-lane f32 bytes (x + weights + out), sublanes padded to 8
    sub_x = _round_up(2 * c_in, 8)
    sub_w = c_in * _round_up(2 * c_out, 8)
    sub_o = _round_up(2 * c_out, 8)
    per_lane = (sub_x + sub_w + sub_o) * 4 * 2
    cap = max(128, (budget_bytes // per_lane) // 128 * 128)

    n128 = mp // 128

    def best_tn(limit_lanes):
        best = 128
        for d in range(1, n128 + 1):
            if n128 % d == 0 and d * 128 <= limit_lanes:
                best = d * 128
        return best

    tn = best_tn(cap)
    # Prefer >= 2 lane tiles when possible so both v7x TensorCores get work.
    if tn == mp and mp >= 256:
        tn = best_tn(mp // 2)
    return mp, tn


# --------------------------------------------------------------------------- #
# Pallas kernel: per-mode complex channel mixing on the retained modes          #
# --------------------------------------------------------------------------- #
def _spectral_mul_kernel(c_in, c_out):
    def kernel(x_ref, w_ref, o_ref):
        # x_ref: (2*Ci, TN)   rows [xr; xi]
        # w_ref: (Ci, 2*Co, TN) rows [wr; wi] per input channel
        # o_ref: (2*Co, TN)   rows [yr; yi]
        tn = o_ref.shape[-1]

        def body(i, carry):
            acc_r, acc_i = carry
            xr = x_ref[pl.ds(i, 1), :]             # (1, TN) real part, channel i
            xi = x_ref[pl.ds(i + c_in, 1), :]      # (1, TN) imag part, channel i
            wr = w_ref[i, :c_out, :]               # (Co, TN)
            wi = w_ref[i, c_out:, :]               # (Co, TN)
            acc_r = acc_r + xr * wr - xi * wi
            acc_i = acc_i + xr * wi + xi * wr
            return acc_r, acc_i

        zeros = jnp.zeros((c_out, tn), jnp.float32)
        acc_r, acc_i = jax.lax.fori_loop(0, c_in, body, (zeros, zeros),
                                         unroll=True)
        o_ref[:c_out, :] = acc_r
        o_ref[c_out:, :] = acc_i

    return kernel


def spectral_mode_mul(x_st, w_st, c_in, c_out, tn, vmem_limit_bytes):
    """x_st: (B, 2*Ci, Mp) f32; w_st: (Ci, 2*Co, Mp) f32; Mp multiple of tn."""
    B, _, Mp = x_st.shape
    assert Mp % tn == 0
    n_tiles = Mp // tn

    return pl.pallas_call(
        _spectral_mul_kernel(c_in, c_out),
        # lane tiles OUTER, batch INNER -> weight block index constant over the
        # inner axis: each weight tile is DMA'd once for the whole call.
        grid=(n_tiles, B),
        in_specs=[
            pl.BlockSpec((None, 2 * c_in, tn), lambda n, b: (b, 0, n)),
            pl.BlockSpec((c_in, 2 * c_out, tn), lambda n, b: (0, 0, n)),
        ],
        out_specs=pl.BlockSpec((None, 2 * c_out, tn), lambda n, b: (b, 0, n)),
        out_shape=jax.ShapeDtypeStruct((B, 2 * c_out, Mp), jnp.float32),
        compiler_params=pltpu.CompilerParams(
            dimension_semantics=("parallel", "arbitrary"),
            vmem_limit_bytes=vmem_limit_bytes),
    )(x_st, w_st)


# --------------------------------------------------------------------------- #
# Full forward (FFT glue + Pallas kernel)                                       #
# --------------------------------------------------------------------------- #
def _spectral_conv2d_forward(x, w1_r, w1_i, w2_r, w2_i, modes1, modes2):
    B, Ci, H, W = x.shape
    Co = w1_r.shape[1]
    Wf = W // 2 + 1
    assert 2 * modes1 <= H and modes2 <= Wf

    x_ft = jnp.fft.rfft2(x.astype(jnp.float32))        # glue (no Pallas FFT)

    # gather the two retained corners, flatten modes onto lanes
    M = 2 * modes1 * modes2
    x_lo = x_ft[:, :, :modes1, :modes2]
    x_hi = x_ft[:, :, H - modes1:, :modes2]
    xc = jnp.concatenate([x_lo, x_hi], axis=2).reshape(B, Ci, M)

    # per-mode complex weights for both corners, flattened the same way and
    # stacked real/imag on the output-channel (sublane) axis: (Ci, 2*Co, M)
    wr = jnp.concatenate([w1_r, w2_r], axis=2).reshape(Ci, Co, M)
    wi = jnp.concatenate([w1_i, w2_i], axis=2).reshape(Ci, Co, M)
    w_st = jnp.concatenate([wr, wi], axis=1)

    budget, vmem_limit = _vmem_budget_bytes()
    Mp, tn = _choose_tile(M, Ci, Co, budget)
    pad = Mp - M

    x_st = jnp.concatenate([jnp.real(xc), jnp.imag(xc)], axis=1)   # (B, 2Ci, M)
    x_st = jnp.pad(x_st, ((0, 0), (0, 0), (0, pad)))
    w_st = jnp.pad(w_st, ((0, 0), (0, 0), (0, pad)))

    out_st = spectral_mode_mul(x_st, w_st, Ci, Co, tn, vmem_limit)   # Pallas

    out_c = (out_st[:, :Co, :M] + 1j * out_st[:, Co:, :M]).reshape(
        B, Co, 2 * modes1, modes2)

    # scatter the processed modes back onto the dense rFFT grid (zeros elsewhere)
    out_ft = jnp.zeros((B, Co, H, Wf), jnp.complex64)
    out_ft = out_ft.at[:, :, :modes1, :modes2].set(out_c[:, :, :modes1, :])
    out_ft = out_ft.at[:, :, H - modes1:, :modes2].set(out_c[:, :, modes1:, :])

    return jnp.fft.irfft2(out_ft, s=(H, W))                        # glue


spectral_conv2d_forward = jax.jit(_spectral_conv2d_forward,
                                  static_argnums=(5, 6))


# --------------------------------------------------------------------------- #
# Pure-JAX reference (mirrors the PyTorch forward, gridy=None)                  #
# --------------------------------------------------------------------------- #
def ref_forward(x, w1_r, w1_i, w2_r, w2_i, modes1, modes2):
    B, Ci, H, W = x.shape
    Co = w1_r.shape[1]
    Wf = W // 2 + 1
    hp = jax.lax.Precision.HIGHEST
    x_ft = jnp.fft.rfft2(x.astype(jnp.float32))
    w1 = w1_r + 1j * w1_i
    w2 = w2_r + 1j * w2_i
    a = jnp.einsum('bixy,ioxy->boxy', x_ft[:, :, :modes1, :modes2], w1, precision=hp)
    b = jnp.einsum('bixy,ioxy->boxy', x_ft[:, :, H - modes1:, :modes2], w2, precision=hp)
    out_ft = jnp.zeros((B, Co, H, Wf), jnp.complex64)
    out_ft = out_ft.at[:, :, :modes1, :modes2].set(a)
    out_ft = out_ft.at[:, :, H - modes1:, :modes2].set(b)
    return jnp.fft.irfft2(out_ft, s=(H, W))


# --------------------------------------------------------------------------- #
if __name__ == "__main__":
    B, Ci, Co, H, W = 2, 4, 4, 16, 16
    modes1, modes2 = 4, 4

    key = jax.random.PRNGKey(0)
    k1, k2, k3, k4, kx = jax.random.split(key, 5)
    scale = 1.0 / (Ci * Co)
    wshape = (Ci, Co, modes1, modes2)
    # matches torch init: scale * rand(..., dtype=cfloat)  (uniform real & imag)
    w1_r = scale * jax.random.uniform(k1, wshape, jnp.float32)
    w1_i = scale * jax.random.uniform(k2, wshape, jnp.float32)
    w2_r = scale * jax.random.uniform(k3, wshape, jnp.float32)
    w2_i = scale * jax.random.uniform(k4, wshape, jnp.float32)
    x = jax.random.normal(kx, (B, Ci, H, W), dtype=jnp.float32)

    out = spectral_conv2d_forward(x, w1_r, w1_i, w2_r, w2_i, modes1, modes2)
    out = jax.block_until_ready(out)
    assert out.shape == (B, Co, H, W)

    ref = jax.block_until_ready(ref_forward(x, w1_r, w1_i, w2_r, w2_i, modes1, modes2))
    if not np.allclose(np.asarray(out), np.asarray(ref), rtol=1e-3, atol=1e-4):
        raise AssertionError("Pallas kernel output mismatch vs reference")

    print("KERNEL_OK")
</pallas_src>

<mosaic_0001>
module attributes {stable_mosaic.version = 11 : i64} {
  func.func @kernel(%arg0: i32, %arg1: i32, %arg2: memref<1x8x128xf32, #tpu.memory_space<vmem>>, %arg3: memref<4x8x128xf32, #tpu.memory_space<vmem>>, %arg4: memref<1x8x128xf32, #tpu.memory_space<vmem>>) attributes {dimension_semantics = [#tpu.dimension_semantics<parallel>, #tpu.dimension_semantics<arbitrary>], iteration_bounds = array<i64: 1, 2>, scalar_prefetch = 0 : i64, scratch_operands = 0 : i64, tpu.core_type = #tpu.core_type<tc>, window_params = [{transform_indices = @transform_0, window_bounds = array<i64: 1, 8, 128>}, {transform_indices = @transform_1, window_bounds = array<i64: 4, 8, 128>}, {transform_indices = @transform_2, window_bounds = array<i64: 1, 8, 128>}]} {
    %cst = arith.constant 0.000000e+00 : f32
    %0 = vector.broadcast %cst : f32 to vector<4x128xf32>
    %c0_i32 = arith.constant 0 : i32
    %c0 = arith.constant 0 : index
    %1 = arith.index_cast %c0_i32 : i32 to index
    %c0_0 = arith.constant 0 : index
    %2 = vector.load %arg2[%c0, %1, %c0_0] : memref<1x8x128xf32, #tpu.memory_space<vmem>>, vector<1x1x128xf32>
    %3 = vector.shape_cast %2 : vector<1x1x128xf32> to vector<1x128xf32>
    %c4_i32 = arith.constant 4 : i32
    %4 = arith.addi %c0_i32, %c4_i32 : i32
    %c0_1 = arith.constant 0 : index
    %5 = arith.index_cast %4 : i32 to index
    %c0_2 = arith.constant 0 : index
    %6 = vector.load %arg2[%c0_1, %5, %c0_2] : memref<1x8x128xf32, #tpu.memory_space<vmem>>, vector<1x1x128xf32>
    %7 = vector.shape_cast %6 : vector<1x1x128xf32> to vector<1x128xf32>
    %8 = arith.index_cast %c0_i32 : i32 to index
    %c0_3 = arith.constant 0 : index
    %c0_4 = arith.constant 0 : index
    %9 = vector.load %arg3[%8, %c0_3, %c0_4] : memref<4x8x128xf32, #tpu.memory_space<vmem>>, vector<1x4x128xf32>
    %10 = vector.shape_cast %9 : vector<1x4x128xf32> to vector<4x128xf32>
    %11 = arith.index_cast %c0_i32 : i32 to index
    %c4 = arith.constant 4 : index
    %c0_5 = arith.constant 0 : index
    %12 = vector.load %arg3[%11, %c4, %c0_5] : memref<4x8x128xf32, #tpu.memory_space<vmem>>, vector<1x4x128xf32>
    %13 = vector.shape_cast %12 : vector<1x4x128xf32> to vector<4x128xf32>
    %14 = vector.broadcast %3 : vector<1x128xf32> to vector<4x128xf32>
    %15 = arith.mulf %14, %10 : vector<4x128xf32>
    %16 = arith.addf %0, %15 : vector<4x128xf32>
    %17 = vector.broadcast %7 : vector<1x128xf32> to vector<4x128xf32>
    %18 = arith.mulf %17, %13 : vector<4x128xf32>
    %19 = arith.subf %16, %18 : vector<4x128xf32>
    %20 = vector.broadcast %3 : vector<1x128xf32> to vector<4x128xf32>
    %21 = arith.mulf %20, %13 : vector<4x128xf32>
    %22 = arith.addf %0, %21 : vector<4x128xf32>
    %23 = vector.broadcast %7 : vector<1x128xf32> to vector<4x128xf32>
    %24 = arith.mulf %23, %10 : vector<4x128xf32>
    %25 = arith.addf %22, %24 : vector<4x128xf32>
    %c1_i32 = arith.constant 1 : i32
    %c0_6 = arith.constant 0 : index
    %26 = arith.index_cast %c1_i32 : i32 to index
    %c0_7 = arith.constant 0 : index
    %27 = vector.load %arg2[%c0_6, %26, %c0_7] : memref<1x8x128xf32, #tpu.memory_space<vmem>>, vector<1x1x128xf32>
    %28 = vector.shape_cast %27 : vector<1x1x128xf32> to vector<1x128xf32>
    %c4_i32_8 = arith.constant 4 : i32
    %29 = arith.addi %c1_i32, %c4_i32_8 : i32
    %c0_9 = arith.constant 0 : index
    %30 = arith.index_cast %29 : i32 to index
    %c0_10 = arith.constant 0 : index
    %31 = vector.load %arg2[%c0_9, %30, %c0_10] : memref<1x8x128xf32, #tpu.memory_space<vmem>>, vector<1x1x128xf32>
    %32 = vector.shape_cast %31 : vector<1x1x128xf32> to vector<1x128xf32>
    %33 = arith.index_cast %c1_i32 : i32 to index
    %c0_11 = arith.constant 0 : index
    %c0_12 = arith.constant 0 : index
    %34 = vector.load %arg3[%33, %c0_11, %c0_12] : memref<4x8x128xf32, #tpu.memory_space<vmem>>, vector<1x4x128xf32>
    %35 = vector.shape_cast %34 : vector<1x4x128xf32> to vector<4x128xf32>
    %36 = arith.index_cast %c1_i32 : i32 to index
    %c4_13 = arith.constant 4 : index
    %c0_14 = arith.constant 0 : index
    %37 = vector.load %arg3[%36, %c4_13, %c0_14] : memref<4x8x128xf32, #tpu.memory_space<vmem>>, vector<1x4x128xf32>
    %38 = vector.shape_cast %37 : vector<1x4x128xf32> to vector<4x128xf32>
    %39 = vector.broadcast %28 : vector<1x128xf32> to vector<4x128xf32>
    %40 = arith.mulf %39, %35 : vector<4x128xf32>
    %41 = arith.addf %19, %40 : vector<4x128xf32>
    %42 = vector.broadcast %32 : vector<1x128xf32> to vector<4x128xf32>
    %43 = arith.mulf %42, %38 : vector<4x128xf32>
    %44 = arith.subf %41, %43 : vector<4x128xf32>
    %45 = vector.broadcast %28 : vector<1x128xf32> to vector<4x128xf32>
    %46 = arith.mulf %45, %38 : vector<4x128xf32>
    %47 = arith.addf %25, %46 : vector<4x128xf32>
    %48 = vector.broadcast %32 : vector<1x128xf32> to vector<4x128xf32>
    %49 = arith.mulf %48, %35 : vector<4x128xf32>
    %50 = arith.addf %47, %49 : vector<4x128xf32>
    %c2_i32 = arith.constant 2 : i32
    %c0_15 = arith.constant 0 : index
    %51 = arith.index_cast %c2_i32 : i32 to index
    %c0_16 = arith.constant 0 : index
    %52 = vector.load %arg2[%c0_15, %51, %c0_16] : memref<1x8x128xf32, #tpu.memory_space<vmem>>, vector<1x1x128xf32>
    %53 = vector.shape_cast %52 : vector<1x1x128xf32> to vector<1x128xf32>
    %c4_i32_17 = arith.constant 4 : i32
    %54 = arith.addi %c2_i32, %c4_i32_17 : i32
    %c0_18 = arith.constant 0 : index
    %55 = arith.index_cast %54 : i32 to index
    %c0_19 = arith.constant 0 : index
    %56 = vector.load %arg2[%c0_18, %55, %c0_19] : memref<1x8x128xf32, #tpu.memory_space<vmem>>, vector<1x1x128xf32>
    %57 = vector.shape_cast %56 : vector<1x1x128xf32> to vector<1x128xf32>
    %58 = arith.index_cast %c2_i32 : i32 to index
    %c0_20 = arith.constant 0 : index
    %c0_21 = arith.constant 0 : index
    %59 = vector.load %arg3[%58, %c0_20, %c0_21] : memref<4x8x128xf32, #tpu.memory_space<vmem>>, vector<1x4x128xf32>
    %60 = vector.shape_cast %59 : vector<1x4x128xf32> to vector<4x128xf32>
    %61 = arith.index_cast %c2_i32 : i32 to index
    %c4_22 = arith.constant 4 : index
    %c0_23 = arith.constant 0 : index
    %62 = vector.load %arg3[%61, %c4_22, %c0_23] : memref<4x8x128xf32, #tpu.memory_space<vmem>>, vector<1x4x128xf32>
    %63 = vector.shape_cast %62 : vector<1x4x128xf32> to vector<4x128xf32>
    %64 = vector.broadcast %53 : vector<1x128xf32> to vector<4x128xf32>
    %65 = arith.mulf %64, %60 : vector<4x128xf32>
    %66 = arith.addf %44, %65 : vector<4x128xf32>
    %67 = vector.broadcast %57 : vector<1x128xf32> to vector<4x128xf32>
    %68 = arith.mulf %67, %63 : vector<4x128xf32>
    %69 = arith.subf %66, %68 : vector<4x128xf32>
    %70 = vector.broadcast %53 : vector<1x128xf32> to vector<4x128xf32>
    %71 = arith.mulf %70, %63 : vector<4x128xf32>
    %72 = arith.addf %50, %71 : vector<4x128xf32>
    %73 = vector.broadcast %57 : vector<1x128xf32> to vector<4x128xf32>
    %74 = arith.mulf %73, %60 : vector<4x128xf32>
    %75 = arith.addf %72, %74 : vector<4x128xf32>
    %c3_i32 = arith.constant 3 : i32
    %c0_24 = arith.constant 0 : index
    %76 = arith.index_cast %c3_i32 : i32 to index
    %c0_25 = arith.constant 0 : index
    %77 = vector.load %arg2[%c0_24, %76, %c0_25] : memref<1x8x128xf32, #tpu.memory_space<vmem>>, vector<1x1x128xf32>
    %78 = vector.shape_cast %77 : vector<1x1x128xf32> to vector<1x128xf32>
    %c4_i32_26 = arith.constant 4 : i32
    %79 = arith.addi %c3_i32, %c4_i32_26 : i32
    %c0_27 = arith.constant 0 : index
    %80 = arith.index_cast %79 : i32 to index
    %c0_28 = arith.constant 0 : index
    %81 = vector.load %arg2[%c0_27, %80, %c0_28] : memref<1x8x128xf32, #tpu.memory_space<vmem>>, vector<1x1x128xf32>
    %82 = vector.shape_cast %81 : vector<1x1x128xf32> to vector<1x128xf32>
    %83 = arith.index_cast %c3_i32 : i32 to index
    %c0_29 = arith.constant 0 : index
    %c0_30 = arith.constant 0 : index
    %84 = vector.load %arg3[%83, %c0_29, %c0_30] : memref<4x8x128xf32, #tpu.memory_space<vmem>>, vector<1x4x128xf32>
    %85 = vector.shape_cast %84 : vector<1x4x128xf32> to vector<4x128xf32>
    %86 = arith.index_cast %c3_i32 : i32 to index
    %c4_31 = arith.constant 4 : index
    %c0_32 = arith.constant 0 : index
    %87 = vector.load %arg3[%86, %c4_31, %c0_32] : memref<4x8x128xf32, #tpu.memory_space<vmem>>, vector<1x4x128xf32>
    %88 = vector.shape_cast %87 : vector<1x4x128xf32> to vector<4x128xf32>
    %89 = vector.broadcast %78 : vector<1x128xf32> to vector<4x128xf32>
    %90 = arith.mulf %89, %85 : vector<4x128xf32>
    %91 = arith.addf %69, %90 : vector<4x128xf32>
    %92 = vector.broadcast %82 : vector<1x128xf32> to vector<4x128xf32>
    %93 = arith.mulf %92, %88 : vector<4x128xf32>
    %94 = arith.subf %91, %93 : vector<4x128xf32>
    %95 = vector.broadcast %78 : vector<1x128xf32> to vector<4x128xf32>
    %96 = arith.mulf %95, %88 : vector<4x128xf32>
    %97 = arith.addf %75, %96 : vector<4x128xf32>
    %98 = vector.broadcast %82 : vector<1x128xf32> to vector<4x128xf32>
    %99 = arith.mulf %98, %85 : vector<4x128xf32>
    %100 = arith.addf %97, %99 : vector<4x128xf32>
    %c4_i32_33 = arith.constant 4 : i32
    %c0_34 = arith.constant 0 : index
    %c0_35 = arith.constant 0 : index
    %c0_36 = arith.constant 0 : index
    %101 = vector.load %arg4[%c0_34, %c0_35, %c0_36] : memref<1x8x128xf32, #tpu.memory_space<vmem>>, vector<1x4x128xf32>
    %102 = vector.shape_cast %101 : vector<1x4x128xf32> to vector<4x128xf32>
    %103 = vector.shape_cast %94 : vector<4x128xf32> to vector<1x4x128xf32>
    tpu.vector_store %arg4[%c0_34, %c0_35, %c0_36], %103 {strides = array<i32>} : memref<1x8x128xf32, #tpu.memory_space<vmem>>, vector<1x4x128xf32>,
    %c0_37 = arith.constant 0 : index
    %c4_38 = arith.constant 4 : index
    %c0_39 = arith.constant 0 : index
    %104 = vector.load %arg4[%c0_37, %c4_38, %c0_39] : memref<1x8x128xf32, #tpu.memory_space<vmem>>, vector<1x4x128xf32>
    %105 = vector.shape_cast %104 : vector<1x4x128xf32> to vector<4x128xf32>
    %106 = vector.shape_cast %100 : vector<4x128xf32> to vector<1x4x128xf32>
    tpu.vector_store %arg4[%c0_37, %c4_38, %c0_39], %106 {strides = array<i32>} : memref<1x8x128xf32, #tpu.memory_space<vmem>>, vector<1x4x128xf32>,
    return
  }
  func.func @transform_0(%arg0: i32, %arg1: i32) -> (i32, i32, i32) {
    %c0_i32 = arith.constant 0 : i32
    %c0_i32_0 = arith.constant 0 : i32
    return %arg1, %c0_i32, %arg0 : i32, i32, i32
  }
  func.func @transform_1(%arg0: i32, %arg1: i32) -> (i32, i32, i32) {
    %c0_i32 = arith.constant 0 : i32
    %c0_i32_0 = arith.constant 0 : i32
    %c0_i32_1 = arith.constant 0 : i32
    return %c0_i32, %c0_i32_0, %arg0 : i32, i32, i32
  }
  func.func @transform_2(%arg0: i32, %arg1: i32) -> (i32, i32, i32) {
    %c0_i32 = arith.constant 0 : i32
    %c0_i32_0 = arith.constant 0 : i32
    return %arg1, %c0_i32, %arg0 : i32, i32, i32
  }
}

</mosaic_0001>

<bundles_post_ra>
// kernel: reverse.1
= control target key start
LH: loop header
LB: loop body
LE: loop exit
PB: predicated region body
PF: predicated region fallthrough
CT: control target
= control target key end

     0   :  { %v72_v3 = vlaneseq  ;;  %v65_v6 = vld [vmem:[#allocation0 + $0x7] ss:$-1 sm:$0xff]  ;;  %v79_v8 = vld [vmem:[#allocation0 + $0x17] ss:$-1 sm:$0xff]  ;;  %s331_s0 = inlined_call_operand.vmem [shape: f32[2,4,16,7], index: 0, kind: input, shape index: {}]   ;;  %s332_s1 = inlined_call_operand.vmem [shape: f32[2,4,16,7], index: 1, kind: output, shape index: {}]  }
   0x1   :  { %v45_v0 = vld [vmem:[%s331_s0] sm:$0xff]  ;;  %v47_v1 = vld [vmem:[%s331_s0 + $0x8] sm:$0xff]  ;;  %v49_v2 = vld [vmem:[%s331_s0 + $0x10] sm:$0xff]  ;;  %v66_v12 = vrot.slane %v65_v6, 1  ;;  %v80_v13 = vrot.slane %v79_v8, 1 }
   0x2   :  { %46 = vst [vmem:[#allocation0 + $0x8] sm:$0xff] %v45_v0  ;;  %v51_v4 = vld [vmem:[%s331_s0 + $0x18] sm:$0xff]  ;;  %v53_v5 = vld [vmem:[%s331_s0 + $0x20] sm:$0xff]  ;;  %v55_v7 = vld [vmem:[%s331_s0 + $0x28] sm:$0xff]  ;;  %v73_v10 = vshrl.u32 %v72_v3, 7 }
   0x3   :  { %48 = vst [vmem:[#allocation0 + $0x18] sm:$0xff] %v47_v1  ;;  %v57_v9 = vld [vmem:[%s331_s0 + $0x30] sm:$0xff]  ;;  %v59_v11 = vld [vmem:[%s331_s0 + $0x38] sm:$0xff]  ;;  %v93_v14 = vld [vmem:[#allocation0 + $0x27] ss:$-1 sm:$0xff] }
   0x4   :  { %50 = vst [vmem:[#allocation0 + $0x28] sm:$0xff] %v49_v2  ;;  %vm74_vm0 = vcmp.lt.s32.totalorder %v73_v10, 7  ;;  %v107_v16 = vld [vmem:[#allocation0 + $0x37] ss:$-1 sm:$0xff]  ;;  %v94_v19 = vrot.slane %v93_v14, 1 }
   0x5   :  { %52 = vst [vmem:[#allocation0 + $0x38] sm:$0xff] %v51_v4  ;;  %v121_v22 = vld [vmem:[#allocation0 + $0x47] ss:$-1 sm:$0xff]  ;;  %v108_v24 = vrot.slane %v107_v16, 1  ;;  %v135_v28 = vld [vmem:[#allocation0 + $0x57] ss:$-1 sm:$0xff] }
   0x6   :  { %54 = vst [vmem:[#allocation0 + $0x48] sm:$0xff] %v53_v5  ;;  %v122_v29 = vrot.slane %v121_v22, 1  ;;  %v149_v32 = vld [vmem:[#allocation0 + $0x67] ss:$-1 sm:$0xff]  ;;  %v136_v33 = vrot.slane %v135_v28, 1 }
   0x7   :  { %56 = vst [vmem:[#allocation0 + $0x58] sm:$0xff] %v55_v7  ;;  %v163_v36 = vld [vmem:[#allocation0 + $0x77] ss:$-1 sm:$0xff]  ;;  %v150_v37 = vrot.slane %v149_v32, 1 }
   0x8   :  { %58 = vst [vmem:[#allocation0 + $0x68] sm:$0xff] %v57_v9  ;;  %v164_v40 = vrot.slane %v163_v36, 1 }
   0x9   :  { %60 = vst [vmem:[#allocation0 + $0x78] sm:$0xff] %v59_v11  ;;  %v70_v15 = vld [vmem:[#allocation0 + $0xf] ss:$-1 sm:$0xff] }
   0xa   :  { %67 = vst [vmem:[#allocation1] sm:$0xff] %v66_v12  ;;  %v71_v17 = vrot.slane %v70_v15, 1  ;;  %v84_v18 = vld [vmem:[#allocation0 + $0x1f] ss:$-1 sm:$0xff] }
   0xb   :  { %81 = vst [vmem:[#allocation1 + $0x8] sm:$0xff] %v80_v13  ;;  %v85_v20 = vrot.slane %v84_v18, 1  ;;  %v98_v21 = vld [vmem:[#allocation0 + $0x2f] ss:$-1 sm:$0xff] }
   0xc   :  { %75 = vst.msk [vmem:[#allocation1] sm:$0xff] %vm74_vm0, %v71_v17  ;;  %v99_v23 = vrot.slane %v98_v21, 1  ;;  %v112_v25 = vld [vmem:[#allocation0 + $0x3f] ss:$-1 sm:$0xff] }
   0xd   :  { %89 = vst.msk [vmem:[#allocation1 + $0x8] sm:$0xff] %vm74_vm0, %v85_v20  ;;  %v113_v26 = vrot.slane %v112_v25, 1  ;;  %v126_v27 = vld [vmem:[#allocation0 + $0x4f] ss:$-1 sm:$0xff] }
   0xe   :  { %95 = vst [vmem:[#allocation1 + $0x10] sm:$0xff] %v94_v19  ;;  %v140_v30 = vld [vmem:[#allocation0 + $0x5f] ss:$-1 sm:$0xff]  ;;  %v127_v31 = vrot.slane %v126_v27, 1 }
   0xf   :  { %103 = vst.msk [vmem:[#allocation1 + $0x10] sm:$0xff] %vm74_vm0, %v99_v23  ;;  %v154_v34 = vld [vmem:[#allocation0 + $0x6f] ss:$-1 sm:$0xff]  ;;  %v141_v35 = vrot.slane %v140_v30, 1 }
  0x10   :  { %109 = vst [vmem:[#allocation1 + $0x18] sm:$0xff] %v108_v24  ;;  %v168_v38 = vld [vmem:[#allocation0 + $0x7f] ss:$-1 sm:$0xff]  ;;  %v155_v39 = vrot.slane %v154_v34, 1 }
  0x11   :  { %117 = vst.msk [vmem:[#allocation1 + $0x18] sm:$0xff] %vm74_vm0, %v113_v26  ;;  %v169_v41 = vrot.slane %v168_v38, 1 }
  0x12   :  { %123 = vst [vmem:[#allocation1 + $0x20] sm:$0xff] %v122_v29 }
  0x13   :  { %131 = vst.msk [vmem:[#allocation1 + $0x20] sm:$0xff] %vm74_vm0, %v127_v31  ;;  %v216_v42 = vld [vmem:[#allocation1] sm:$0xff] }
  0x14   :  { %137 = vst [vmem:[#allocation1 + $0x28] sm:$0xff] %v136_v33  ;;  %v218_v43 = vld [vmem:[#allocation1 + $0x8] sm:$0xff] }
  0x15   :  { %145 = vst.msk [vmem:[#allocation1 + $0x28] sm:$0xff] %vm74_vm0, %v141_v35 }
  0x16   :  { %151 = vst [vmem:[#allocation1 + $0x30] sm:$0xff] %v150_v37  ;;  %v220_v44 = vld [vmem:[#allocation1 + $0x10] sm:$0xff] }
  0x17   :  { %159 = vst.msk [vmem:[#allocation1 + $0x30] sm:$0xff] %vm74_vm0, %v155_v39 }
  0x18   :  { %165 = vst [vmem:[#allocation1 + $0x38] sm:$0xff] %v164_v40  ;;  %v222_v45 = vld [vmem:[#allocation1 + $0x18] sm:$0xff] }
  0x19   :  { %173 = vst.msk [vmem:[#allocation1 + $0x38] sm:$0xff] %vm74_vm0, %v169_v41 }
  0x1a   :  { %217 = vst [vmem:[%s332_s1] sm:$0xff] %v216_v42  ;;  %v224_v46 = vld [vmem:[#allocation1 + $0x20] sm:$0xff] }
  0x1b   :  { %219 = vst [vmem:[%s332_s1 + $0x8] sm:$0xff] %v218_v43 }
  0x1c   :  { %221 = vst [vmem:[%s332_s1 + $0x10] sm:$0xff] %v220_v44  ;;  %v226_v47 = vld [vmem:[#allocation1 + $0x28] sm:$0xff] }
  0x1d   :  { %223 = vst [vmem:[%s332_s1 + $0x18] sm:$0xff] %v222_v45 }
  0x1e   :  { %225 = vst [vmem:[%s332_s1 + $0x20] sm:$0xff] %v224_v46  ;;  %v228_v48 = vld [vmem:[#allocation1 + $0x30] sm:$0xff] }
  0x1f   :  { %227 = vst [vmem:[%s332_s1 + $0x28] sm:$0xff] %v226_v47 }
  0x20   :  { %229 = vst [vmem:[%s332_s1 + $0x30] sm:$0xff] %v228_v48  ;;  %v230_v49 = vld [vmem:[#allocation1 + $0x38] sm:$0xff] }
  0x21   :  { %231 = vst [vmem:[%s332_s1 + $0x38] sm:$0xff] %v230_v49 }

// kernel: _spectral_conv2d_forward.1
= control target key start
LH: loop header
LB: loop body
LE: loop exit
PB: predicated region body
PF: predicated region fallthrough
CT: control target
= control target key end

     0   :  { %s425_s9 = smov 0   ;;  %s427_s10 = smov 0   ;;  %s499_s0 = inlined_call_operand.vmem [shape: f32[2,8,128], index: 0, kind: input, shape index: {}]   ;;  %s500_s1 = inlined_call_operand.vmem [shape: f32[4,8,128], index: 1, kind: input, shape index: {}]   ;;  %s501_s2 = inlined_call_operand.vmem [shape: f32[2,8,128], index: 2, kind: output, shape index: {}]  }
   0x1   :  { %s429_s11 = smov 0  }
   0x2 LB: > { %s21_s12 = sadd.s32 1, %s404_s10  ;;  %p343_p0 = scmp.ge.s32.totalorder %s408_s11, 1  ;;  %s408_s11 = sphi %s429_s11, %s12_s11   ;;  %s404_s10 = sphi %s427_s10, %s503_s10   ;;  %s400_s9 = sphi %s425_s9, %s502_s9  }
   0x3   : > { %p22_p1 = scmp.ge.s32.totalorder %s21_s12, 2  ;;  %p139_p2 = scmp.lt.s32.totalorder %s408_s11, 3 }
   0x5   : > { %s505_s12 = smov (%p22_p1, %s21_s12), 0  ;;  %p140_p3 = pnand %p343_p0, %p139_p2 }
   0x6   : > { %p169_p4 = scmp.lt.s32.totalorder (!%p140_p3), %s400_s9, 1 }
   0x7   : > { %143 = sbr.rel (%p140_p3) target bundleno = 34 (0x22), region = 28 }
   0xc   : > { %s507_s9 = smov (!%p169_p4, %s400_s9), 1  ;;  %v189_v0 = vld [vmem:[%s500_s1] sm:$0xf]  ;;  %v190_v1 = vld [vmem:[%s500_s1 + $0x4] sm:$0xf] }
   0xd   : > { %s344_s13 = sshll.u32 %s507_s9, 3  ;;  %v346_v2 = vld [vmem:[%s500_s1 + $0x8] sm:$0xf]  ;;  %v347_v3 = vld [vmem:[%s500_s1 + $0xc] sm:$0xf] }
   0xe   : > { %s454_s18 = scalar_lea.vmem %s499_s0, %s344_s13  ;;  %v348_v11 = vld [vmem:[%s500_s1 + $0x10] sm:$0xf]  ;;  %v349_v15 = vld [vmem:[%s500_s1 + $0x14] sm:$0xf]  ;;  %v350_v27 = vld [vmem:[%s500_s1 + $0x18] sm:$0xf]  ;;  %s186_s7 = scalar_lea.vmem %s501_s2, %s344_s13 }
   0xf   : > { %v378_v4 = vld [vmem:[%s454_s18] ss:$0 sm:$0xff]  ;;  %v379_v5 = vld [vmem:[%s454_s18 + $0x4] ss:$0 sm:$0xff]  ;;  %v380_v7 = vld [vmem:[%s454_s18 + $0x1] ss:$0 sm:$0xff] }
  0x10   : > { %v192_v6 = vmul.f32 %v378_v4, %v189_v0  ;;  %v381_v8 = vld [vmem:[%s454_s18 + $0x5] ss:$0 sm:$0xff]  ;;  %v197_v9 = vmul.f32 %v378_v4, %v190_v1  ;;  %v195_v10 = vmul.f32 %v379_v5, %v190_v1  ;;  %v382_v12 = vld [vmem:[%s454_s18 + $0x2] ss:$0 sm:$0xff]  ;;  %v199_v13 = vmul.f32 %v379_v5, %v189_v0  ;;  %v383_v19 = vld [vmem:[%s454_s18 + $0x6] ss:$0 sm:$0xff] }
  0x11   : > { %v207_v14 = vmul.f32 %v380_v7, %v346_v2  ;;  %v212_v16 = vmul.f32 %v380_v7, %v347_v3  ;;  %v210_v18 = vmul.f32 %v381_v8, %v347_v3  ;;  %v214_v21 = vmul.f32 %v381_v8, %v346_v2  ;;  %v384_v24 = vld [vmem:[%s454_s18 + $0x3] ss:$0 sm:$0xff]  ;;  %v351_v28 = vld [vmem:[%s500_s1 + $0x1c] sm:$0xf]  ;;  %v385_v31 = vld [vmem:[%s454_s18 + $0x7] ss:$0 sm:$0xff] }
  0x12   : > { %v196_v17 = vsub.f32 %v192_v6, %v195_v10  ;;  %v200_v20 = vadd.f32 %v199_v13, %v197_v9  ;;  %v222_v23 = vmul.f32 %v382_v12, %v348_v11  ;;  %v227_v26 = vmul.f32 %v382_v12, %v349_v15 }
  0x13   : > { %v225_v30 = vmul.f32 %v383_v19, %v349_v15  ;;  %v229_v33 = vmul.f32 %v383_v19, %v348_v11  ;;  %v237_v35 = vmul.f32 %v384_v24, %v350_v27  ;;  %v242_v37 = vmul.f32 %v384_v24, %v351_v28 }
  0x14   : > { %v208_v22 = vadd.f32 %v207_v14, %v196_v17  ;;  %v213_v25 = vadd.f32 %v212_v16, %v200_v20  ;;  %v240_v39 = vmul.f32 %v385_v31, %v351_v28  ;;  %v244_v41 = vmul.f32 %v385_v31, %v350_v27 }
  0x16   : > { %v211_v29 = vsub.f32 %v208_v22, %v210_v18  ;;  %v215_v32 = vadd.f32 %v214_v21, %v213_v25 }
  0x18   : > { %v223_v34 = vadd.f32 %v222_v23, %v211_v29  ;;  %v228_v36 = vadd.f32 %v227_v26, %v215_v32 }
  0x1a   : > { %v226_v38 = vsub.f32 %v223_v34, %v225_v30  ;;  %v230_v40 = vadd.f32 %v229_v33, %v228_v36 }
  0x1c   : > { %v238_v42 = vadd.f32 %v237_v35, %v226_v38  ;;  %v243_v43 = vadd.f32 %v242_v37, %v230_v40 }
  0x1e   : > { %v241_v44 = vsub.f32 %v238_v42, %v240_v39  ;;  %v245_v45 = vadd.f32 %v244_v41, %v243_v43 }
  0x20   : > { %246 = vst [vmem:[%s186_s7] sm:$0xf] %v241_v44 }
  0x21   : > { %247 = vst [vmem:[%s186_s7 + $0x4] sm:$0xf] %v245_v45 }
  0x22 PF: > { %s12_s11 = sadd.s32 1, %s408_s11   ;;  %s502_s9 = smov %s404_s10 }
  0x23   : > { %p9_p5 = scmp.ge.s32.totalorder %s12_s11, 4   ;;  %s503_s10 = smov %s505_s12 }
  0x25   :  { %11 = sbr.rel (!%p9_p5) target bundleno = 2 (0x2), region = 64 }

</bundles_post_ra>
